<compile_context>
chip_gen: v6e
topology: v6e:2x2x1
jax: 0.10.0
libtpu: 0.0.40
codegen_flags: <defaults>
</compile_context>

<pallas_src>
import functools

import jax
import jax.numpy as jnp
from jax.experimental import pallas as pl
from jax.experimental.pallas import tpu as pltpu

LANES = 128
CHUNK_R = 512          # rows per inner-loop step (bounds live VMEM temporaries)


def _sublane_multiple(dtype):
    # f32 tiles are (8,128); 2-byte dtypes pack 16 sublanes, 1-byte dtypes 32.
    return max(8, 32 // jnp.dtype(dtype).itemsize)


def _chip_config():
    """(max_block_rows, num_cores) for the local TPU generation."""
    kind = ""
    try:
        kind = jax.devices()[0].device_kind.lower()
    except Exception:
        pass
    is_v7 = ("v7" in kind) or ("7x" in kind)
    if is_v7:
        # 2 TCs/chip, 32 MiB scoped VMEM default: 8192x128 f32 = 4 MiB/input
        # block, 2 inputs x 2 pipeline buffers = 16 MiB.
        return 8192, 2
    # v5e/v6e: single TC.  4096x128 f32 = 2 MiB/input block (8 MiB double
    # buffered) fits v5e's 16 MiB scoped default with room to spare and is
    # ~90-95% of HBM roofline on v6e.
    return 4096, 1


def _wbce_kernel(params_ref, x_ref, t_ref, o_ref, *, smooth, n_valid, block_r,
                 chunk_r, steps_per_core, any_pad):
    c = pl.program_id(0)          # per-TensorCore split (size 1 on v5e/v6e)
    i = pl.program_id(1)          # "arbitrary" reduction axis

    @pl.when(i == 0)
    def _():
        o_ref[...] = jnp.zeros_like(o_ref)

    nw1 = params_ref[0]           # -weights[1]  (final negation baked in)
    nw0 = params_ref[1]           # -weights[0]

    gi = c * steps_per_core + i   # global block index
    n_chunks = block_r // chunk_r

    def process(xv, tv, row0, masked):
        x = xv.astype(jnp.float32)
        t = tv.astype(jnp.float32)
        s = jax.nn.sigmoid(x)
        la = jnp.log(s + smooth)          # log(sigmoid(x) + eps)   (exact spec)
        lb = jnp.log(1.0 - s + smooth)    # log(1 - sigmoid(x) + eps)
        tb = nw0 * lb
        nl = tb + t * (nw1 * la - tb)     # = -(w1*t*la + w0*(1-t)*lb)
        if masked:
            n_full_rows = n_valid // LANES            # static
            n_rem = n_valid % LANES                   # static
            row = (gi * block_r + row0
                   + jax.lax.broadcasted_iota(jnp.int32, nl.shape, 0))
            mask = row < n_full_rows
            if n_rem:
                col = jax.lax.broadcasted_iota(jnp.int32, nl.shape, 1)
                mask = mask | ((row == n_full_rows) & (col < n_rem))
            nl = jnp.where(mask, nl, 0.0)  # select: garbage/NaN cannot leak
        # Fold (chunk,128) -> (8,128) with elementwise VPU adds into the
        # resident accumulator; the single cross-lane reduce happens outside.
        rows_here = nl.shape[0]
        o_ref[...] += nl.reshape(rows_here // 8, 8, LANES).sum(axis=0)

    def accumulate(masked):
        if n_chunks == 1:
            process(x_ref[...], t_ref[...], 0, masked)
        else:
            def body(j, carry):
                r0 = pl.multiple_of(j * chunk_r, chunk_r)
                process(x_ref[pl.ds(r0, chunk_r), :],
                        t_ref[pl.ds(r0, chunk_r), :], r0, masked)
                return carry
            jax.lax.fori_loop(0, n_chunks, body, 0)

    if any_pad:
        n_full_blocks = n_valid // (block_r * LANES)   # static

        @pl.when(gi < n_full_blocks)       # fully-valid blocks: unmasked path
        def _():
            accumulate(False)

        @pl.when(gi >= n_full_blocks)      # only tail / overshoot blocks mask
        def _():
            accumulate(True)
    else:
        accumulate(False)


def weighted_bce_loss(inputs, targets, weights, smooth=1e-6):
    """Pallas equivalent of WeightedBCELoss(weights, smooth).forward(inputs, targets)."""
    n_valid = int(inputs.size)
    x = inputs.reshape(-1)
    t = targets.reshape(-1)           # native dtype; upcast happens in-kernel

    max_block_r, num_cores = _chip_config()

    # Pad only if the flat length is not a multiple of the 128-lane width
    # (never for typical NCHW shapes).  All other padding (rows to a block
    # multiple, per-core split overshoot) is handled by Pallas boundary blocks
    # plus the in-kernel mask -> no extra HBM copies.
    lane_pad = (-n_valid) % LANES
    if lane_pad:
        x = jnp.pad(x, (0, lane_pad))
        t = jnp.pad(t, (0, lane_pad))
    rows = (n_valid + lane_pad) // LANES

    sub_mult = max(_sublane_multiple(x.dtype), _sublane_multiple(t.dtype))
    if rows <= 2 * CHUNK_R:
        block_r = -(-rows // sub_mult) * sub_mult   # single chunk per block
        chunk_r = block_r
    else:
        block_r = min(max_block_r, -(-rows // CHUNK_R) * CHUNK_R)
        chunk_r = CHUNK_R                            # block_r % chunk_r == 0

    total_blocks = -(-rows // block_r)
    steps_per_core = -(-total_blocks // num_cores)
    grid = (num_cores, steps_per_core)
    # True iff the grid covers any element beyond n_valid -> those blocks mask.
    any_pad = (num_cores * steps_per_core * block_r * LANES) != n_valid

    x2 = x.reshape(rows, LANES)
    t2 = t.reshape(rows, LANES)

    if num_cores * steps_per_core > total_blocks:
        # Overshoot steps (odd block count split over 2 cores) re-read the last
        # valid block; they are fully masked to zero in-kernel.
        def in_index(c, i):
            return (jnp.minimum(c * steps_per_core + i, total_blocks - 1), 0)
    else:
        def in_index(c, i):
            return (c * steps_per_core + i, 0)

    # Class weights as a runtime SMEM operand (no recompile per weight pair,
    # works with traced weights).  The final negation is folded in here.
    w = jnp.asarray(weights, dtype=jnp.float32).reshape(-1)
    params = jnp.stack([-w[1], -w[0]])

    kernel = functools.partial(
        _wbce_kernel,
        smooth=float(smooth), n_valid=n_valid, block_r=block_r, chunk_r=chunk_r,
        steps_per_core=steps_per_core, any_pad=any_pad)

    partials = pl.pallas_call(
        kernel,
        out_shape=jax.ShapeDtypeStruct((num_cores * 8, LANES), jnp.float32),
        grid_spec=pltpu.PrefetchScalarGridSpec(
            num_scalar_prefetch=0,
            grid=grid,
            in_specs=[pl.BlockSpec(memory_space=pltpu.MemorySpace.SMEM),
                      pl.BlockSpec((block_r, LANES), in_index),
                      pl.BlockSpec((block_r, LANES), in_index)],
            out_specs=pl.BlockSpec((8, LANES), lambda c, i: (c, 0)),
        ),
        compiler_params=pltpu.CompilerParams(
            dimension_semantics=("parallel", "arbitrary")),
    )(params, x2, t2)

    # Negation already folded into params: tiny epilogue, sum of <=2x(8,128)
    # partials divided by N.
    return jnp.sum(partials) / jnp.float32(n_valid)


def _reference(inputs, targets, weights, smooth=1e-6):
    s = jax.nn.sigmoid(inputs.astype(jnp.float32)).reshape(-1)
    t = targets.astype(jnp.float32).reshape(-1)
    loss = (weights[1] * (t * jnp.log(s + smooth))
            + weights[0] * ((1 - t) * jnp.log(1 - s + smooth)))
    return -jnp.mean(loss)


if __name__ == "__main__":
    key = jax.random.PRNGKey(0)
    k1, k2 = jax.random.split(key)

    # Deterministic "module params": class weights + smoothing constant.
    weights = (0.4, 0.6)
    smooth = 1e-6

    # NCHW logits and binary targets.
    x = jax.random.normal(k1, (2, 4, 16, 16), dtype=jnp.float32)
    t = (jax.random.uniform(k2, (2, 4, 16, 16)) > 0.5).astype(jnp.float32)

    out = weighted_bce_loss(x, t, weights, smooth)
    out = jax.block_until_ready(out)

    ref = _reference(x, t, weights, smooth)
    assert jnp.allclose(out, ref, rtol=1e-5, atol=1e-6), (out, ref)

    print("KERNEL_OK")
</pallas_src>

<mosaic_0001>
module attributes {stable_mosaic.version = 11 : i64} {
  func.func @_wbce_kernel(%arg0: i32, %arg1: i32, %arg2: memref<2xf32, #tpu.memory_space<smem>>, %arg3: memref<16x128xf32, #tpu.memory_space<vmem>>, %arg4: memref<16x128xf32, #tpu.memory_space<vmem>>, %arg5: memref<8x128xf32, #tpu.memory_space<vmem>>) attributes {dimension_semantics = [#tpu.dimension_semantics<parallel>, #tpu.dimension_semantics<arbitrary>], iteration_bounds = array<i64: 1, 1>, scalar_prefetch = 0 : i64, scratch_operands = 0 : i64, tpu.core_type = #tpu.core_type<tc>, window_params = [{transform_indices = @transform_0, window_bounds = array<i64: 2>}, {transform_indices = @transform_1, window_bounds = array<i64: 16, 128>}, {transform_indices = @transform_2, window_bounds = array<i64: 16, 128>}, {transform_indices = @transform_3, window_bounds = array<i64: 8, 128>}]} {
    %c0_i32 = arith.constant 0 : i32
    %0 = arith.cmpi eq, %arg1, %c0_i32 : i32
    %1 = arith.extui %0 : i1 to i32
    %c0_i32_0 = arith.constant 0 : i32
    %2 = arith.cmpi ne, %1, %c0_i32_0 : i32
    scf.if %2 {
      %cst_13 = arith.constant 0.000000e+00 : f32
      %32 = vector.broadcast %cst_13 : f32 to vector<8x128xf32>
      %c0_14 = arith.constant 0 : index
      %c0_15 = arith.constant 0 : index
      %33 = vector.load %arg5[%c0_14, %c0_15] : memref<8x128xf32, #tpu.memory_space<vmem>>, vector<8x128xf32>
      tpu.vector_store %arg5[%c0_14, %c0_15], %32 {strides = array<i32>} : memref<8x128xf32, #tpu.memory_space<vmem>>, vector<8x128xf32>,
    } else {
    }
    %c0 = arith.constant 0 : index
    %3 = memref.load %arg2[%c0] : memref<2xf32, #tpu.memory_space<smem>>
    %c1 = arith.constant 1 : index
    %4 = memref.load %arg2[%c1] : memref<2xf32, #tpu.memory_space<smem>>
    %c0_1 = arith.constant 0 : index
    %c0_2 = arith.constant 0 : index
    %5 = vector.load %arg3[%c0_1, %c0_2] : memref<16x128xf32, #tpu.memory_space<vmem>>, vector<16x128xf32>
    %c0_3 = arith.constant 0 : index
    %c0_4 = arith.constant 0 : index
    %6 = vector.load %arg4[%c0_3, %c0_4] : memref<16x128xf32, #tpu.memory_space<vmem>>, vector<16x128xf32>
    %7 = arith.negf %5 : vector<16x128xf32>
    %8 = math.exp %7 : vector<16x128xf32>
    %cst = arith.constant 1.000000e+00 : f32
    %9 = vector.broadcast %cst : f32 to vector<16x128xf32>
    %10 = arith.addf %9, %8 : vector<16x128xf32>
    %11 = arith.divf %9, %10 : vector<16x128xf32>
    %cst_5 = arith.constant 9.99999997E-7 : f32
    %12 = vector.broadcast %cst_5 : f32 to vector<16x128xf32>
    %13 = arith.addf %11, %12 : vector<16x128xf32>
    %14 = math.log %13 : vector<16x128xf32>
    %cst_6 = arith.constant 1.000000e+00 : f32
    %15 = vector.broadcast %cst_6 : f32 to vector<16x128xf32>
    %16 = arith.subf %15, %11 : vector<16x128xf32>
    %cst_7 = arith.constant 9.99999997E-7 : f32
    %17 = vector.broadcast %cst_7 : f32 to vector<16x128xf32>
    %18 = arith.addf %16, %17 : vector<16x128xf32>
    %19 = math.log %18 : vector<16x128xf32>
    %20 = vector.broadcast %4 : f32 to vector<16x128xf32>
    %21 = arith.mulf %20, %19 : vector<16x128xf32>
    %22 = vector.broadcast %3 : f32 to vector<16x128xf32>
    %23 = arith.mulf %22, %14 : vector<16x128xf32>
    %24 = arith.subf %23, %21 : vector<16x128xf32>
    %25 = arith.mulf %6, %24 : vector<16x128xf32>
    %26 = arith.addf %21, %25 : vector<16x128xf32>
    %c0_8 = arith.constant 0 : index
    %c0_9 = arith.constant 0 : index
    %27 = vector.load %arg5[%c0_8, %c0_9] : memref<8x128xf32, #tpu.memory_space<vmem>>, vector<8x128xf32>
    %28 = vector.shape_cast %26 : vector<16x128xf32> to vector<2x8x128xf32>
    %cst_10 = arith.constant dense<0.000000e+00> : vector<8x128xf32>
    %29 = vector.multi_reduction <add>, %28, %cst_10 [0] : vector<2x8x128xf32> to vector<8x128xf32>
    %30 = arith.addf %27, %29 : vector<8x128xf32>
    %c0_11 = arith.constant 0 : index
    %c0_12 = arith.constant 0 : index
    %31 = vector.load %arg5[%c0_11, %c0_12] : memref<8x128xf32, #tpu.memory_space<vmem>>, vector<8x128xf32>
    tpu.vector_store %arg5[%c0_11, %c0_12], %30 {strides = array<i32>} : memref<8x128xf32, #tpu.memory_space<vmem>>, vector<8x128xf32>,
    return
  }
  func.func @transform_0(%arg0: i32, %arg1: i32) -> i32 {
    %c0_i32 = arith.constant 0 : i32
    %c0_i32_0 = arith.constant 0 : i32
    return %c0_i32 : i32
  }
  func.func @transform_1(%arg0: i32, %arg1: i32) -> (i32, i32) {
    %c1_i32 = arith.constant 1 : i32
    %0 = arith.muli %arg0, %c1_i32 : i32
    %1 = arith.addi %0, %arg1 : i32
    %c0_i32 = arith.constant 0 : i32
    %c0_i32_0 = arith.constant 0 : i32
    return %1, %c0_i32 : i32, i32
  }
  func.func @transform_2(%arg0: i32, %arg1: i32) -> (i32, i32) {
    %c1_i32 = arith.constant 1 : i32
    %0 = arith.muli %arg0, %c1_i32 : i32
    %1 = arith.addi %0, %arg1 : i32
    %c0_i32 = arith.constant 0 : i32
    %c0_i32_0 = arith.constant 0 : i32
    return %1, %c0_i32 : i32, i32
  }
  func.func @transform_3(%arg0: i32, %arg1: i32) -> (i32, i32) {
    %c0_i32 = arith.constant 0 : i32
    %c0_i32_0 = arith.constant 0 : i32
    return %arg0, %c0_i32 : i32, i32
  }
}

</mosaic_0001>

<bundles_post_ra>
// kernel: tpu_custom_call.1
= control target key start
LH: loop header
LB: loop body
LE: loop exit
PB: predicated region body
PF: predicated region fallthrough
CT: control target
= control target key end

     0   :  { %8 = vsyncpa [#allocation5], 0  ;;  %s276_s0 = inlined_call_operand.hbm [shape: f32[2], index: 0, kind: input, shape index: {}]   ;;  %s277_s1 = inlined_call_operand.hbm [shape: f32[16,128], index: 1, kind: input, shape index: {}]   ;;  %s278_s2 = inlined_call_operand.hbm [shape: f32[16,128], index: 2, kind: input, shape index: {}]   ;;  %s279_s3 = inlined_call_operand.hbm [shape: f32[8,128], index: 3, kind: output, shape index: {}]  }
   0x1   :  { %9 = vsyncpa [#allocation3], 0 }
   0x2   :  { %10 = vsyncpa [#allocation8], 0 }
   0x3   :  { %11 = vsyncpa [#allocation4], 0  ;;  %s238_s12 = smov [#allocation2]   ;;  %s239_s15 = smov [#allocation6]  }
   0x4   :  { %19 = dma.hbm_to_smem %s276_s0, 16, %s238_s12, [#allocation5]  }
   0x5   :  { %s29_s16 = sshll.u32 %s239_s15, 4  ;;  %s30_s16 = int_to_ptr.vmem [resolvable:$true] %s29_s16 }
   0x6   :  { %s178_s17 = scalar_lea.vmem %s30_s16, 256  ;;  %p183_p1 = scmp.lt.s32.totalorder %s30_s16, %s30_s16 }
   0x7   :  { %p179_p0 = scmp.ne.s32.totalorder %s30_s16, %s178_s17  ;;  %p184_p2 = scmp.lt.s32.totalorder %s178_s17, %s178_s17 }
   0x9   :  { %p185_p3 = por %p184_p2, %p183_p1 }
   0xb   :  { %p186_p4 = pnand %p185_p3, %p179_p0 }
   0xd   :  { %189 = shalt.err (!%p186_p4)
}
   0xe   :  { %s240_s18 = smov 128   ;;  %s241_s19 = smov 8  }
   0xf   :  { %35 = dma.hbm_to_vmem [thread:$0]  %s277_s1, 256, %s30_s16, [#allocation3], %s240_s18, %s240_s18, %s241_s19  }
  0x10   :  { %s242_s22 = smov [#allocation7]  }
  0x11   :  { %s45_s23 = sshll.u32 %s242_s22, 4  ;;  %s46_s23 = int_to_ptr.vmem [resolvable:$true] %s45_s23 }
  0x12   :  { %s198_s0 = scalar_lea.vmem %s46_s23, 256  ;;  %p203_p6 = scmp.lt.s32.totalorder %s46_s23, %s46_s23 }
  0x13   :  { %p199_p5 = scmp.ne.s32.totalorder %s46_s23, %s198_s0  ;;  %p204_p7 = scmp.lt.s32.totalorder %s198_s0, %s198_s0 }
  0x15   :  { %p205_p8 = por %p204_p7, %p203_p6 }
  0x17   :  { %p206_p9 = pnand %p205_p8, %p199_p5 }
  0x19   :  { %209 = shalt.err (!%p206_p9)
}
  0x1a   :  { %51 = dma.hbm_to_vmem [thread:$0]  %s278_s2, 256, %s46_s23, [#allocation8], %s240_s18, %s240_s18, %s241_s19  }
  0x1b   :  { %230 = dma.done.wait [#allocation5], 16  }
  0x1c   :  { %231 = vsyncadd [#allocation5], 4294967280 }
  0x1d   :  { %232 = dma.done.wait [#allocation3], 256  }
  0x1e   :  { %233 = vsyncadd [#allocation3], 4294967040 }
  0x1f   :  { %234 = dma.done.wait [#allocation8], 256  }
  0x20   :  { %235 = vsyncadd [#allocation8], 4294967040 }
  0x21   :  { %61 = sfence }
  0x22   :  { %v73_v0 = vld [vmem:[#allocation6] sm:$0xff]  ;;  %v74_v1 = vld [vmem:[#allocation6 + $0x8] sm:$0xff]  ;;  %s71_s1 = sld [smem:[#allocation2]]  ;;  %v75_v29 = vld [vmem:[#allocation7] sm:$0xff]  ;;  %s243_s26 = smov [#allocation9]  }
  0x23   :  { %v137_v2 = vmul.f32 -1.442695, %v73_v0  ;;  %v138_v3 = vmul.f32 -1.442695, %v74_v1  ;;  %s136_s2 = sld [smem:[#allocation2 + $0x1]]  ;;  %v76_v31 = vld [vmem:[#allocation7 + $0x8] sm:$0xff] }
  0x24   :  { %s125_s27 = sshll.u32 %s243_s26, 4  ;;  %s126_s27 = int_to_ptr.vmem [resolvable:$true] %s125_s27 }
  0x25   :  { %146 = vpow2.f32 %v137_v2  ;;  %s210_s28 = scalar_lea.vmem %s126_s27, 128  ;;  %p215_p11 = scmp.lt.s32.totalorder %s126_s27, %s126_s27 }
  0x26   :  { %148 = vpow2.f32 %v138_v3  ;;  %p211_p10 = scmp.ne.s32.totalorder %s126_s27, %s210_s28  ;;  %p216_p12 = scmp.lt.s32.totalorder %s210_s28, %s210_s28 }
  0x28   :  { %v106_v17 = vstv %s71_s1  ;;  %p217_p13 = por %p216_p12, %p215_p11 }
  0x29   :  { %v103_v22 = vstv %s136_s2 }
  0x2a   :  { %p218_p0 = pnand %p217_p13, %p211_p10 }
  0x32   :  { %v147_v4 = vpop.eup %146 }
  0x33   :  { %v149_v5 = vpop.eup %148  ;;  %v83_v6 = vadd.f32 1.0, %v147_v4 }
  0x34   :  { %v84_v7 = vadd.f32 1.0, %v149_v5 }
  0x35   :  { %150 = vrcp.f32 %v83_v6 }
  0x36   :  { %152 = vrcp.f32 %v84_v7 }
  0x42   :  { %v151_v8 = vpop.eup %150 }
  0x43   :  { %v153_v9 = vpop.eup %152  ;;  %v89_v10 = vadd.f32 1e-06, %v151_v8  ;;  %v95_v11 = vsub.f32 1.0, %v151_v8 }
  0x44   :  { %v90_v12 = vadd.f32 1e-06, %v153_v9  ;;  %v96_v13 = vsub.f32 1.0, %v153_v9 }
  0x45   :  { %154 = vlog2.f32 %v89_v10  ;;  %v97_v14 = vadd.f32 1e-06, %v95_v11 }
  0x46   :  { %156 = vlog2.f32 %v90_v12  ;;  %v98_v15 = vadd.f32 1e-06, %v96_v13 }
  0x47   :  { %158 = vlog2.f32 %v97_v14 }
  0x48   :  { %160 = vlog2.f32 %v98_v15 }
  0x52   :  { %v155_v16 = vpop.eup %154 }
  0x53   :  { %v157_v18 = vpop.eup %156  ;;  %v92_v19 = vmul.f32 0.6931472, %v155_v16 }
  0x54   :  { %v159_v20 = vpop.eup %158  ;;  %v94_v21 = vmul.f32 0.6931472, %v157_v18 }
  0x55   :  { %v161_v23 = vpop.eup %160  ;;  %v100_v24 = vmul.f32 0.6931472, %v159_v20  ;;  %v107_v25 = vmul.f32 %v106_v17, %v92_v19 }
  0x56   :  { %v102_v26 = vmul.f32 0.6931472, %v161_v23  ;;  %v108_v27 = vmul.f32 %v106_v17, %v94_v21 }
  0x57   :  { %v104_v28 = vmul.f32 %v103_v22, %v100_v24 }
  0x58   :  { %v105_v30 = vmul.f32 %v103_v22, %v102_v26 }
  0x59   :  { %v109_v32 = vsub.f32 %v107_v25, %v104_v28 }
  0x5a   :  { %v110_v33 = vsub.f32 %v108_v27, %v105_v30 }
  0x5b   :  { %v111_v34 = vmul.f32 %v109_v32, %v75_v29 }
  0x5c   :  { %v112_v35 = vmul.f32 %v110_v33, %v76_v31 }
  0x5d   :  { %v113_v36 = vadd.f32 %v111_v34, %v104_v28 }
  0x5e   :  { %v114_v37 = vadd.f32 %v112_v35, %v105_v30 }
  0x60   :  { %v116_v38 = vadd.f32 %v114_v37, %v113_v36 }
  0x62   :  { %118 = vst [vmem:[#allocation9] sm:$0xff] %v116_v38 }
  0x63   :  { %221 = shalt.err (!%p218_p0)
}
  0x64   :  { %128 = dma.vmem_to_hbm [thread:$0]  %s126_s27, 128, %s279_s3, [#allocation4]  }
  0x65   :  { %236 = dma.done.wait [#allocation4], 128  }
  0x66   :  { %237 = vsyncadd [#allocation4], 4294967168 }
  0x67   :  { %132 = vsyncpa [#allocation3], 1 }
  0x68   :  { %133 = vsyncpa [#allocation8], 1 }
  0x69   :  { %134 = vsyncpa [#allocation4], 1 }
  0x6a   :  { %135 = vsyncpa [#allocation5], 1 }

</bundles_post_ra>
